<compile_context>
chip_gen: v7x
topology: tpu7x:2x2x1
jax: 0.10.0
libtpu: 0.0.40
codegen_flags: <defaults>
</compile_context>

<pallas_src>
import jax
import jax.numpy as jnp
from jax.experimental import pallas as pl
from jax.experimental.pallas import tpu as pltpu

LANES = 128      # vreg lane count: last dim of every block
ACC_SUB = 8      # f32 sublane count: shape of the per-split (8, 128) accumulator


def _round_up(x: int, m: int) -> int:
    return ((x + m - 1) // m) * m


def _chip_config():
    """Returns (tensorcores_per_chip, per-input-per-buffer DMA tile budget in bytes)."""
    try:
        kind = jax.devices()[0].device_kind.lower()
    except Exception:  # defensive: never fail config lookup
        return 1, 2 * 1024 * 1024
    if "v5 lite" in kind or "v5e" in kind or "v5lite" in kind:
        # v5e: 1 TC; default scoped VMEM is 16 MiB -> 2 MiB tiles (8 MiB double-buffered).
        return 1, 2 * 1024 * 1024
    if "v7" in kind or "7x" in kind or "tpu7" in kind:
        # v7x: 2 TCs per chip sharing HBM; 4 MiB tiles (16 MiB double-buffered).
        return 2, 4 * 1024 * 1024
    if "v6" in kind or "trillium" in kind:
        # v6e: 1 TC; 32 MiB default scoped VMEM -> 4 MiB tiles.
        return 1, 4 * 1024 * 1024
    # Unknown / v4 / v5p: conservative defaults.
    return 1, 2 * 1024 * 1024


def _make_l2_sum_kernel(row_tile, kblocks, valid_rows, need_mask):
    full_rows = (row_tile // ACC_SUB) * ACC_SUB   # rows handled by vreg-wise (8,128) adds
    rem_rows = row_tile - full_rows               # <8 leftover rows (only for tiny single-block)

    def _accum(o_ref, sq):
        if full_rows:
            body = sq if full_rows == row_tile else sq[:full_rows, :]
            # (full_rows,128) -> (full_rows//8, 8, 128); leading-axis sum is a chain of
            # vreg-wise VPU adds -- no per-tile cross-lane/XLU reduction.
            o_ref[...] += jnp.sum(body.reshape(-1, ACC_SUB, LANES), axis=0)
        if rem_rows:
            # Only reachable for a single-block array whose row count is not a multiple
            # of 8 (rare, tiny).  Static sub-vreg accumulate into the first rem_rows rows.
            tail = sq if full_rows == 0 else sq[full_rows:, :]
            o_ref[0:rem_rows, :] += tail

    def kernel(x_ref, y_ref, o_ref):
        c = pl.program_id(0)   # parallel split (one per TensorCore on v7x)
        k = pl.program_id(1)   # reduction step within the split

        @pl.when(k == 0)
        def _():
            o_ref[...] = jnp.zeros_like(o_ref)

        # Upcast BEFORE subtracting (avoids precision loss for bf16 inputs).
        d = x_ref[...].astype(jnp.float32) - y_ref[...].astype(jnp.float32)
        sq = d * d

        if need_mask:
            # Runtime-gated row mask: only the (at most one) partial/dummy tile per split
            # pays the iota + compare + select; every other tile stays on the bare path.
            row0 = (c * kblocks + k) * row_tile
            is_tail = row0 + row_tile > valid_rows

            @pl.when(is_tail)
            def _():
                rid = row0 + jax.lax.broadcasted_iota(jnp.int32, (row_tile, LANES), 0)
                _accum(o_ref, jnp.where(rid < valid_rows, sq, 0.0))

            @pl.when(jnp.logical_not(is_tail))
            def _():
                _accum(o_ref, sq)
        else:
            _accum(o_ref, sq)

    return kernel


def l2_loss(outputs: jax.Array, targets: jax.Array) -> jax.Array:
    assert outputs.shape == targets.shape, "outputs/targets shape mismatch"
    n_elems = outputs.size
    assert n_elems > 0

    x = outputs.reshape(-1)
    y = targets.reshape(-1)

    # Fast path: element count divisible by 128 -> zero-copy (rows,128) view.
    # Rare fallback: pad with <128 zeros so the 2-D view exists (zeros add 0 to the sum).
    # TODO(synk): mask the sub-128 tail fully in-kernel to avoid this pad copy as well.
    pad = (-n_elems) % LANES
    if pad:
        x = jnp.pad(x, (0, pad))
        y = jnp.pad(y, (0, pad))

    rows = (n_elems + pad) // LANES
    x2d = x.reshape(rows, LANES)   # contiguous reshape: free
    y2d = y.reshape(rows, LANES)

    num_tc, tile_bytes = _chip_config()

    # Dtype-aware alignment: 8 rows per sublane-tile for f32, 16 for bf16, 32 for int8/fp8.
    itemsizes = (jnp.dtype(x2d.dtype).itemsize, jnp.dtype(y2d.dtype).itemsize)
    pack_rows = max(ACC_SUB, 8 * (4 // min(itemsizes)))
    # Per-step DMA budget: keep bytes/tile ~constant regardless of dtype width.
    max_row_tile = max(pack_rows,
                       (tile_bytes // (LANES * max(itemsizes))) // pack_rows * pack_rows)

    splits = 1
    n_blocks = 1
    row_tile = rows
    if num_tc >= 2 and rows > pack_rows:
        # v7x: shard the row range across the two TensorCores with an even number of
        # equal blocks, so no core re-reads a clamped dummy tile from HBM.
        kb = max(1, pl.cdiv(rows, 2 * max_row_tile))
        row_tile = min(_round_up(pl.cdiv(rows, 2 * kb), pack_rows), max_row_tile)
        n_blocks = pl.cdiv(rows, row_tile)
        if n_blocks >= 2:
            splits = 2
    if splits == 1:
        # Single-TensorCore chips (v5e/v6e) or work too small to split.
        row_tile = rows if rows <= max_row_tile else max_row_tile
        n_blocks = pl.cdiv(rows, row_tile)

    kblocks = pl.cdiv(n_blocks, splits)
    has_dummy = splits * kblocks > n_blocks            # safety net; avoided by construction
    need_mask = has_dummy or (rows % row_tile != 0)
    last_block = n_blocks - 1

    def in_index_map(c, k):
        b = c * kblocks + k
        if has_dummy:
            # Clamp so the DMA never targets a fully out-of-bounds block; the runtime
            # row mask zeroes the duplicated contribution of the clamped block.
            b = jnp.minimum(b, last_block)
        return (b, 0)

    kernel = _make_l2_sum_kernel(row_tile, kblocks, rows, need_mask)

    partials = pl.pallas_call(
        kernel,
        out_shape=jax.ShapeDtypeStruct((splits * ACC_SUB, LANES), jnp.float32),
        grid_spec=pltpu.PrefetchScalarGridSpec(
            num_scalar_prefetch=0,
            grid=(splits, kblocks),
            in_specs=[
                pl.BlockSpec((row_tile, LANES), in_index_map),
                pl.BlockSpec((row_tile, LANES), in_index_map),
            ],
            # Lane-dense (8,128) partial per split; index map ignores k, so the block is
            # VMEM-resident across the whole reduction axis (accumulate directly into it).
            out_specs=pl.BlockSpec((ACC_SUB, LANES), lambda c, k: (c, 0)),
        ),
        compiler_params=pltpu.CompilerParams(
            dimension_semantics=("parallel", "arbitrary"),
        ),
        # Pipeline depth stays at the default 2 buffers: per-tile VPU work is far below
        # per-tile DMA time, so VMEM is better spent on bigger tiles than deeper buffering.
    )(x2d, y2d)

    # Cheap glue: one final cross-lane reduce of the tiny partials, then the mean over
    # the true (unpadded) element count.
    return (jnp.sum(partials) / jnp.float32(n_elems)).astype(jnp.float32)


if __name__ == "__main__":
    key = jax.random.PRNGKey(0)
    k1, k2 = jax.random.split(key)
    # NCHW-style small inputs consistent with a typical conv-output loss.
    outputs = jax.random.normal(k1, (2, 4, 16, 16), dtype=jnp.float32)
    targets = jax.random.normal(k2, (2, 4, 16, 16), dtype=jnp.float32)

    loss = l2_loss(outputs, targets)
    jax.block_until_ready(loss)
    ref = jnp.mean((outputs - targets) ** 2)
    assert jnp.allclose(loss, ref, rtol=1e-6, atol=1e-6), (loss, ref)

    # bf16 inputs exercise the upcast-before-subtract path and dtype-aware tiling.
    ob = outputs.astype(jnp.bfloat16)
    tb = targets.astype(jnp.bfloat16)
    loss_bf16 = l2_loss(ob, tb)
    jax.block_until_ready(loss_bf16)
    ref_bf16 = jnp.mean((ob.astype(jnp.float32) - tb.astype(jnp.float32)) ** 2)
    assert jnp.allclose(loss_bf16, ref_bf16, rtol=1e-5, atol=1e-6), (loss_bf16, ref_bf16)

    print("KERNEL_OK")
</pallas_src>

<mosaic_0001>
module attributes {stable_mosaic.version = 11 : i64} {
  func.func @kernel(%arg0: i32, %arg1: i32, %arg2: memref<16x128xf32, #tpu.memory_space<vmem>>, %arg3: memref<16x128xf32, #tpu.memory_space<vmem>>, %arg4: memref<8x128xf32, #tpu.memory_space<vmem>>) attributes {dimension_semantics = [#tpu.dimension_semantics<parallel>, #tpu.dimension_semantics<arbitrary>], iteration_bounds = array<i64: 1, 1>, scalar_prefetch = 0 : i64, scratch_operands = 0 : i64, tpu.core_type = #tpu.core_type<tc>, window_params = [{transform_indices = @transform_0, window_bounds = array<i64: 16, 128>}, {transform_indices = @transform_1, window_bounds = array<i64: 16, 128>}, {transform_indices = @transform_2, window_bounds = array<i64: 8, 128>}]} {
    %c0_i32 = arith.constant 0 : i32
    %0 = arith.cmpi eq, %arg1, %c0_i32 : i32
    %1 = arith.extui %0 : i1 to i32
    %c0_i32_0 = arith.constant 0 : i32
    %2 = arith.cmpi ne, %1, %c0_i32_0 : i32
    scf.if %2 {
      %cst_8 = arith.constant 0.000000e+00 : f32
      %12 = vector.broadcast %cst_8 : f32 to vector<8x128xf32>
      %c0_9 = arith.constant 0 : index
      %c0_10 = arith.constant 0 : index
      %13 = vector.load %arg4[%c0_9, %c0_10] : memref<8x128xf32, #tpu.memory_space<vmem>>, vector<8x128xf32>
      tpu.vector_store %arg4[%c0_9, %c0_10], %12 {strides = array<i32>} : memref<8x128xf32, #tpu.memory_space<vmem>>, vector<8x128xf32>,
    } else {
    }
    %c0 = arith.constant 0 : index
    %c0_1 = arith.constant 0 : index
    %3 = vector.load %arg2[%c0, %c0_1] : memref<16x128xf32, #tpu.memory_space<vmem>>, vector<16x128xf32>
    %c0_2 = arith.constant 0 : index
    %c0_3 = arith.constant 0 : index
    %4 = vector.load %arg3[%c0_2, %c0_3] : memref<16x128xf32, #tpu.memory_space<vmem>>, vector<16x128xf32>
    %5 = arith.subf %3, %4 : vector<16x128xf32>
    %6 = arith.mulf %5, %5 : vector<16x128xf32>
    %c0_4 = arith.constant 0 : index
    %c0_5 = arith.constant 0 : index
    %7 = vector.load %arg4[%c0_4, %c0_5] : memref<8x128xf32, #tpu.memory_space<vmem>>, vector<8x128xf32>
    %8 = vector.shape_cast %6 : vector<16x128xf32> to vector<2x8x128xf32>
    %cst = arith.constant dense<0.000000e+00> : vector<8x128xf32>
    %9 = vector.multi_reduction <add>, %8, %cst [0] : vector<2x8x128xf32> to vector<8x128xf32>
    %10 = arith.addf %7, %9 : vector<8x128xf32>
    %c0_6 = arith.constant 0 : index
    %c0_7 = arith.constant 0 : index
    %11 = vector.load %arg4[%c0_6, %c0_7] : memref<8x128xf32, #tpu.memory_space<vmem>>, vector<8x128xf32>
    tpu.vector_store %arg4[%c0_6, %c0_7], %10 {strides = array<i32>} : memref<8x128xf32, #tpu.memory_space<vmem>>, vector<8x128xf32>,
    return
  }
  func.func @transform_0(%arg0: i32, %arg1: i32) -> (i32, i32) {
    %c1_i32 = arith.constant 1 : i32
    %0 = arith.muli %arg0, %c1_i32 : i32
    %1 = arith.addi %0, %arg1 : i32
    %c0_i32 = arith.constant 0 : i32
    %c0_i32_0 = arith.constant 0 : i32
    return %1, %c0_i32 : i32, i32
  }
  func.func @transform_1(%arg0: i32, %arg1: i32) -> (i32, i32) {
    %c1_i32 = arith.constant 1 : i32
    %0 = arith.muli %arg0, %c1_i32 : i32
    %1 = arith.addi %0, %arg1 : i32
    %c0_i32 = arith.constant 0 : i32
    %c0_i32_0 = arith.constant 0 : i32
    return %1, %c0_i32 : i32, i32
  }
  func.func @transform_2(%arg0: i32, %arg1: i32) -> (i32, i32) {
    %c0_i32 = arith.constant 0 : i32
    %c0_i32_0 = arith.constant 0 : i32
    return %arg0, %c0_i32 : i32, i32
  }
}

</mosaic_0001>

<bundles_post_ra>
// kernel: tpu_custom_call.1
= control target key start
LH: loop header
LB: loop body
LE: loop exit
PB: predicated region body
PF: predicated region fallthrough
CT: control target
= control target key end

     0   :  { %7 = vsyncpa [#allocation3], 0  ;;  %s219_s0 = inlined_call_operand.hbm [shape: f32[16,128], index: 0, kind: input, shape index: {}]   ;;  %s220_s1 = inlined_call_operand.hbm [shape: f32[16,128], index: 1, kind: input, shape index: {}]   ;;  %s221_s2 = inlined_call_operand.hbm [shape: f32[8,128], index: 2, kind: output, shape index: {}]  }
   0x1   :  { %8 = vsyncpa [#allocation6], 0 }
   0x2   :  { %9 = vsyncpa [#allocation4], 0  ;;  %s163_s9 = smov [#allocation2]   ;;  %s91_s13 = scalar_lea.hbm %s219_s0, 256 }
   0x3   :  { %s19_s10 = sshll.u32 %s163_s9, 4  ;;  %p92_p0 = scmp.ne.s32.totalorder %s219_s0, %s91_s13  ;;  %s20_s10 = int_to_ptr.vmem [resolvable:$true] %s19_s10 }
   0x4   :  { %p95_p1 = scmp.lt.u32.totalorder %s91_s13, %s219_s0 }
   0x6   :  { %p97_p2 = pnand %p95_p1, %p92_p0 }
   0x8   :  { %100 = shalt.err (!%p97_p2)
}
   0x9   :  { %s101_s18 = scalar_lea.vmem %s20_s10, 256  ;;  %p106_p4 = scmp.lt.s32.totalorder %s20_s10, %s20_s10 }
   0xa   :  { %p102_p3 = scmp.ne.s32.totalorder %s20_s10, %s101_s18  ;;  %p107_p5 = scmp.lt.s32.totalorder %s101_s18, %s101_s18 }
   0xc   :  { %p108_p6 = por %p107_p5, %p106_p4 }
   0xe   :  { %p109_p7 = pnand %p108_p6, %p102_p3 }
  0x10   :  { %112 = shalt.err (!%p109_p7)
}
  0x11   :  { %s164_s19 = smov 128   ;;  %s165_s20 = smov 8  }
  0x12   :  { %25 = dma.hbm_to_vmem [thread:$0]  %s219_s0, 256, %s20_s10, [#allocation3], %s164_s19, %s164_s19, %s165_s20  }
  0x13   :  { %s166_s23 = smov [#allocation5]   ;;  %s113_s27 = scalar_lea.hbm %s220_s1, 256 }
  0x14   :  { %s35_s24 = sshll.u32 %s166_s23, 4  ;;  %p114_p8 = scmp.ne.s32.totalorder %s220_s1, %s113_s27  ;;  %s36_s24 = int_to_ptr.vmem [resolvable:$true] %s35_s24 }
  0x15   :  { %p117_p9 = scmp.lt.u32.totalorder %s113_s27, %s220_s1 }
  0x17   :  { %p119_p10 = pnand %p117_p9, %p114_p8 }
  0x19   :  { %122 = shalt.err (!%p119_p10)
}
  0x1a   :  { %s123_s4 = scalar_lea.vmem %s36_s24, 256  ;;  %p128_p12 = scmp.lt.s32.totalorder %s36_s24, %s36_s24 }
  0x1b   :  { %p124_p11 = scmp.ne.s32.totalorder %s36_s24, %s123_s4  ;;  %p129_p13 = scmp.lt.s32.totalorder %s123_s4, %s123_s4 }
  0x1d   :  { %p130_p0 = por %p129_p13, %p128_p12 }
  0x1f   :  { %p131_p1 = pnand %p130_p0, %p124_p11 }
  0x21   :  { %134 = shalt.err (!%p131_p1)
}
  0x22   :  { %41 = dma.hbm_to_vmem [thread:$0]  %s220_s1, 256, %s36_s24, [#allocation6], %s164_s19, %s164_s19, %s165_s20  }
  0x23   :  { %157 = dma.done.wait [#allocation3], 256  }
  0x24   :  { %158 = vsyncadd [#allocation3], 4294967040 }
  0x25   :  { %159 = dma.done.wait [#allocation6], 256  }
  0x26   :  { %160 = vsyncadd [#allocation6], 4294967040  ;;  %v57_v0 = vld [vmem:[#allocation2] sm:$0xff]  ;;  %v58_v1 = vld [vmem:[#allocation2 + $0x8] sm:$0xff]  ;;  %s167_s6 = smov [#allocation7]  }
  0x27   :  { %v59_v2 = vld [vmem:[#allocation5] sm:$0xff]  ;;  %v60_v3 = vld [vmem:[#allocation5 + $0x8] sm:$0xff]  ;;  %s75_s7 = sshll.u32 %s167_s6, 4  ;;  %s76_s7 = int_to_ptr.vmem [resolvable:$true] %s75_s7 }
  0x28   :  { %v61_v4 = vsub.f32 %v57_v0, %v59_v2  ;;  %v62_v5 = vsub.f32 %v58_v1, %v60_v3  ;;  %s135_s8 = scalar_lea.vmem %s76_s7, 128  ;;  %p140_p3 = scmp.lt.s32.totalorder %s76_s7, %s76_s7 }
  0x29   :  { %p136_p2 = scmp.ne.s32.totalorder %s76_s7, %s135_s8  ;;  %p141_p4 = scmp.lt.s32.totalorder %s135_s8, %s135_s8 }
  0x2a   :  { %v63_v6 = vmul.f32 %v61_v4, %v61_v4  ;;  %v64_v7 = vmul.f32 %v62_v5, %v62_v5 }
  0x2b   :  { %p142_p5 = por %p141_p4, %p140_p3 }
  0x2c   :  { %v66_v8 = vadd.f32 %v64_v7, %v63_v6 }
  0x2d   :  { %p143_p6 = pnand %p142_p5, %p136_p2 }
  0x2e   :  { %68 = vst [vmem:[#allocation7] sm:$0xff] %v66_v8 }
  0x2f   :  { %146 = shalt.err (!%p143_p6)
}
  0x30   :  { %s147_s10 = scalar_lea.hbm %s221_s2, 128 }
  0x31   :  { %p148_p7 = scmp.ne.s32.totalorder %s221_s2, %s147_s10  ;;  %p151_p8 = scmp.lt.u32.totalorder %s147_s10, %s221_s2 }
  0x33   :  { %p153_p9 = pnand %p151_p8, %p148_p7 }
  0x35   :  { %156 = shalt.err (!%p153_p9)
}
  0x36   :  { %78 = dma.vmem_to_hbm [thread:$0]  %s76_s7, 128, %s221_s2, [#allocation4]  }
  0x37   :  { %161 = dma.done.wait [#allocation4], 128  }
  0x38   :  { %162 = vsyncadd [#allocation4], 4294967168 }
  0x39   :  { %82 = vsyncpa [#allocation3], 1 }
  0x3a   :  { %83 = vsyncpa [#allocation6], 1 }
  0x3b   :  { %84 = vsyncpa [#allocation4], 1 }

</bundles_post_ra>
